<compile_context>
chip_gen: v7x
topology: tpu7x:2x2x1
jax: 0.10.0
libtpu: 0.0.40
codegen_flags: <defaults>
</compile_context>

<pallas_src>
import jax
import jax.numpy as jnp
from jax.experimental import pallas as pl
from jax.experimental.pallas import tpu as pltpu


def _round_up(x, m):
    return (x + m - 1) // m * m


def _sublane_pack(itemsize):
    # rows per vreg sublane group for a given element size
    return {4: 8, 2: 16, 1: 32}.get(itemsize, 8)


def _footprint_bytes(block_b, block_n, K, H, cdt_size, out_size):
    """Approximate VMEM footprint of one pipelined grid step."""
    x = 2 * block_b * K * cdt_size           # double-buffered activation tile
    w1 = K * H * cdt_size                    # Buffered(1): single resident copy
    b1 = H * 4
    w2 = 2 * H * block_n * cdt_size          # double-buffered fc2 weight tile
    b2 = 2 * block_n * 4
    out = 2 * block_b * block_n * out_size   # double-buffered output tile
    h = block_b * H * cdt_size               # fc1 activation scratch
    return x + w1 + b1 + w2 + b2 + out + h


def _derive_tiles(B, K, H, cdt_size, out_size, block_b, block_n,
                  budget=28 << 20):
    """Pick (block_b, block_n) that fit the VMEM budget across generations."""
    sub = _sublane_pack(cdt_size)
    bb_max = min(_round_up(B, sub), 512)

    if block_n is None:
        # Prefer holding W2 resident (no N tiling), else the largest
        # 128-multiple divisor of H that fits the budget.
        cands_n = [H] + [c for c in (1024, 512, 256, 128) if c < H and H % c == 0]
        block_n = cands_n[-1]
        for cand in cands_n:
            if _footprint_bytes(min(bb_max, 256), cand, K, H,
                                cdt_size, out_size) <= budget:
                block_n = cand
                break
    else:
        if block_n % 128 != 0 or H % block_n != 0:
            raise ValueError(
                f"block_n={block_n} must be a multiple of 128 that divides padded H={H}")

    if block_b is None:
        cands_b = [bb_max] + [c for c in (256, 128, 64, 32, 16, 8)
                              if sub <= c < bb_max]
        block_b = sub
        for cand in cands_b:
            if _footprint_bytes(cand, block_n, K, H, cdt_size, out_size) <= budget:
                block_b = cand
                break
    else:
        if block_b % sub != 0:
            raise ValueError(
                f"block_b={block_b} must be a multiple of {sub} for this compute dtype")

    return block_b, block_n


def order_encoder_kernel(x_ref, w1_ref, b1_ref, w2_ref, b2_ref, o_ref, h_ref):
    # fc1 runs exactly once per batch tile (innermost j axis, j == 0) and is
    # cached in VMEM scratch for all fc2 N-tiles of that batch tile.
    @pl.when(pl.program_id(1) == 0)
    def _():
        h = jnp.dot(x_ref[...], w1_ref[...], preferred_element_type=jnp.float32)
        h = jnp.maximum(h + b1_ref[...], 0.0)
        h_ref[...] = h.astype(h_ref.dtype)

    # fc2: cached h @ W2[:, j-tile] on the MXU (f32 acc), bias + ReLU in f32.
    y = jnp.dot(h_ref[...], w2_ref[...], preferred_element_type=jnp.float32)
    y = jnp.maximum(y + b2_ref[...], 0.0)
    o_ref[...] = y.astype(o_ref.dtype)


def prepare_params(w1, b1, w2, b2, *, compute_dtype=None):
    """Pad feature dims to multiples of 128 and cast to the compute dtype ONCE.

    Call this at init (or under jit where it constant-folds), not per forward:
    re-padding per call doubles weight HBM traffic for a memory-bound MLP.
    Zero padding is exact for Linear + ReLU.
    """
    input_dim, hidden_dim = w1.shape
    cdt = jnp.dtype(compute_dtype) if compute_dtype is not None else jnp.dtype(w1.dtype)
    K = _round_up(max(input_dim, 1), 128)
    H = _round_up(max(hidden_dim, 1), 128)

    w1_p = jnp.pad(w1.astype(cdt), ((0, K - input_dim), (0, H - hidden_dim)))
    w2_p = jnp.pad(w2.astype(cdt), ((0, H - hidden_dim), (0, H - hidden_dim)))
    # Biases stay f32: the bias+ReLU epilogue runs in f32 off the MXU accumulator.
    b1_p = jnp.pad(b1.reshape(1, -1).astype(jnp.float32), ((0, 0), (0, H - hidden_dim)))
    b2_p = jnp.pad(b2.reshape(1, -1).astype(jnp.float32), ((0, 0), (0, H - hidden_dim)))

    return dict(w1=w1_p, b1=b1_p, w2=w2_p, b2=b2_p,
                input_dim=input_dim, hidden_dim=hidden_dim,
                compute_dtype=cdt)


def order_encoder(order_states, params, *, block_b=None, block_n=None,
                  keep_padded=False):
    """Forward pass of OrderEncoder using pre-prepared (padded, cast) params.

    order_states: (B, input_dim)
    params: output of prepare_params().
    keep_padded: return the lane-dense (Bp, H) result (for fusion) instead of
                 slicing back to (B, hidden_dim).
    """
    B, input_dim = order_states.shape
    if input_dim != params["input_dim"]:
        raise ValueError("input_dim mismatch with prepared params")
    hidden_dim = params["hidden_dim"]
    cdt = jnp.dtype(params["compute_dtype"])
    w1_p, b1_p, w2_p, b2_p = params["w1"], params["b1"], params["w2"], params["b2"]
    K, H = w1_p.shape
    out_dtype = jnp.dtype(order_states.dtype)

    block_b, block_n = _derive_tiles(B, K, H, cdt.itemsize, out_dtype.itemsize,
                                     block_b, block_n)
    Bp = _round_up(B, block_b)

    # Per-call padding touches only the (cheap) activations.
    x_p = jnp.pad(order_states.astype(cdt), ((0, Bp - B), (0, K - input_dim)))

    grid = (Bp // block_b, H // block_n)
    est = _footprint_bytes(block_b, block_n, K, H, cdt.itemsize, out_dtype.itemsize)
    vmem_limit = min(48 << 20, max(32 << 20, int(est * 1.5)))

    out = pl.pallas_call(
        order_encoder_kernel,
        out_shape=jax.ShapeDtypeStruct((Bp, H), out_dtype),
        grid=grid,
        in_specs=[
            # activations: tiled over batch rows
            pl.BlockSpec((block_b, K), lambda i, j: (i, 0)),
            # fc1 weights + bias: constant index_map -> single resident buffer
            pl.BlockSpec((K, H), lambda i, j: (0, 0),
                         pipeline_mode=pl.Buffered(1)),
            pl.BlockSpec((1, H), lambda i, j: (0, 0),
                         pipeline_mode=pl.Buffered(1)),
            # fc2 weights + bias: tiled over output columns (innermost axis)
            pl.BlockSpec((H, block_n), lambda i, j: (0, j)),
            pl.BlockSpec((1, block_n), lambda i, j: (0, j)),
        ],
        out_specs=pl.BlockSpec((block_b, block_n), lambda i, j: (i, j)),
        # fc1 activations cached across the j (N-tile) axis.
        scratch_shapes=[pltpu.VMEM((block_b, H), cdt)],
        compiler_params=pltpu.CompilerParams(
            # i parallel (megacore shards batch tiles); j arbitrary because the
            # h scratch is carried across j iterations.
            dimension_semantics=("parallel", "arbitrary"),
            vmem_limit_bytes=vmem_limit),
    )(x_p, w1_p, b1_p, w2_p, b2_p)

    if keep_padded:
        return out
    return out[:B, :hidden_dim]


def init_params(key, input_dim, hidden_dim, dtype=jnp.float32):
    # Deterministic init mimicking torch.nn.Linear default (uniform +/- 1/sqrt(fan_in)).
    k1, k2, k3, k4 = jax.random.split(key, 4)
    bound1 = 1.0 / jnp.sqrt(input_dim)
    bound2 = 1.0 / jnp.sqrt(hidden_dim)
    # Weights stored pre-transposed: (in_features, out_features) so kernel does x @ W.
    w1 = jax.random.uniform(k1, (input_dim, hidden_dim), dtype, -bound1, bound1)
    b1 = jax.random.uniform(k2, (hidden_dim,), dtype, -bound1, bound1)
    w2 = jax.random.uniform(k3, (hidden_dim, hidden_dim), dtype, -bound2, bound2)
    b2 = jax.random.uniform(k4, (hidden_dim,), dtype, -bound2, bound2)
    return w1, b1, w2, b2


if __name__ == "__main__":
    key = jax.random.PRNGKey(0)
    batch, input_dim, hidden_dim = 16, 16, 32

    k_x, k_p = jax.random.split(key)
    order_states = jax.random.normal(k_x, (batch, input_dim), jnp.float32)
    w1, b1, w2, b2 = init_params(k_p, input_dim, hidden_dim)

    # Pad/cast the parameters ONCE (f32 compute path for the exactness check;
    # pass compute_dtype=jnp.bfloat16 on v6e/v7x for MXU peak).
    params = prepare_params(w1, b1, w2, b2)

    out = order_encoder(order_states, params)
    out = jax.block_until_ready(out)

    # Pure-JAX reference check (f32 path).
    h_ref = jnp.maximum(order_states @ w1 + b1, 0.0)
    y_ref = jnp.maximum(h_ref @ w2 + b2, 0.0)
    assert out.shape == (batch, hidden_dim)
    assert jnp.allclose(out, y_ref, atol=1e-5, rtol=1e-5)

    print("KERNEL_OK")
</pallas_src>

<mosaic_0001>
module attributes {stable_mosaic.version = 11 : i64} {
  func.func @order_encoder_kernel(%arg0: i32, %arg1: i32, %arg2: memref<16x128xf32, #tpu.memory_space<vmem>>, %arg3: memref<128x128xf32, #tpu.memory_space<vmem>>, %arg4: memref<1x128xf32, #tpu.memory_space<vmem>>, %arg5: memref<128x128xf32, #tpu.memory_space<vmem>>, %arg6: memref<1x128xf32, #tpu.memory_space<vmem>>, %arg7: memref<16x128xf32, #tpu.memory_space<vmem>>, %arg8: memref<16x128xf32, #tpu.memory_space<vmem>>) attributes {dimension_semantics = [#tpu.dimension_semantics<parallel>, #tpu.dimension_semantics<arbitrary>], iteration_bounds = array<i64: 1, 1>, scalar_prefetch = 0 : i64, scratch_operands = 1 : i64, tpu.core_type = #tpu.core_type<tc>, window_params = [{transform_indices = @transform_0, window_bounds = array<i64: 16, 128>}, {pipeline_mode = #tpu.pipeline_mode<synchronous>, transform_indices = @transform_1, window_bounds = array<i64: 128, 128>}, {pipeline_mode = #tpu.pipeline_mode<synchronous>, transform_indices = @transform_2, window_bounds = array<i64: 1, 128>}, {transform_indices = @transform_3, window_bounds = array<i64: 128, 128>}, {transform_indices = @transform_4, window_bounds = array<i64: 1, 128>}, {transform_indices = @transform_5, window_bounds = array<i64: 16, 128>}]} {
    %c0_i32 = arith.constant 0 : i32
    %0 = arith.cmpi eq, %arg1, %c0_i32 : i32
    %1 = arith.extui %0 : i1 to i32
    %c0_i32_0 = arith.constant 0 : i32
    %2 = arith.cmpi ne, %1, %c0_i32_0 : i32
    scf.if %2 {
      %c0_9 = arith.constant 0 : index
      %c0_10 = arith.constant 0 : index
      %12 = vector.load %arg2[%c0_9, %c0_10] : memref<16x128xf32, #tpu.memory_space<vmem>>, vector<16x128xf32>
      %c0_11 = arith.constant 0 : index
      %c0_12 = arith.constant 0 : index
      %13 = vector.load %arg3[%c0_11, %c0_12] : memref<128x128xf32, #tpu.memory_space<vmem>>, vector<128x128xf32>
      %cst_13 = arith.constant dense<0.000000e+00> : vector<16x128xf32>
      %14 = tpu.matmul %12, %13, %cst_13 {dimension_numbers = #tpu.dot_dimension_numbers<[1], [0], [0], [1], [0, 0, 1, 1], [], []>} : vector<16x128xf32>, vector<128x128xf32>, vector<16x128xf32> -> vector<16x128xf32>
      %c0_14 = arith.constant 0 : index
      %c0_15 = arith.constant 0 : index
      %15 = vector.load %arg4[%c0_14, %c0_15] : memref<1x128xf32, #tpu.memory_space<vmem>>, vector<1x128xf32>
      %16 = vector.broadcast %15 : vector<1x128xf32> to vector<16x128xf32>
      %17 = arith.addf %14, %16 : vector<16x128xf32>
      %cst_16 = arith.constant 0.000000e+00 : f32
      %18 = vector.broadcast %cst_16 : f32 to vector<16x128xf32>
      %19 = arith.maximumf %17, %18 : vector<16x128xf32>
      %c0_17 = arith.constant 0 : index
      %c0_18 = arith.constant 0 : index
      %20 = vector.load %arg8[%c0_17, %c0_18] : memref<16x128xf32, #tpu.memory_space<vmem>>, vector<16x128xf32>
      tpu.vector_store %arg8[%c0_17, %c0_18], %19 {strides = array<i32>} : memref<16x128xf32, #tpu.memory_space<vmem>>, vector<16x128xf32>,
    } else {
    }
    %c0 = arith.constant 0 : index
    %c0_1 = arith.constant 0 : index
    %3 = vector.load %arg8[%c0, %c0_1] : memref<16x128xf32, #tpu.memory_space<vmem>>, vector<16x128xf32>
    %c0_2 = arith.constant 0 : index
    %c0_3 = arith.constant 0 : index
    %4 = vector.load %arg5[%c0_2, %c0_3] : memref<128x128xf32, #tpu.memory_space<vmem>>, vector<128x128xf32>
    %cst = arith.constant dense<0.000000e+00> : vector<16x128xf32>
    %5 = tpu.matmul %3, %4, %cst {dimension_numbers = #tpu.dot_dimension_numbers<[1], [0], [0], [1], [0, 0, 1, 1], [], []>} : vector<16x128xf32>, vector<128x128xf32>, vector<16x128xf32> -> vector<16x128xf32>
    %c0_4 = arith.constant 0 : index
    %c0_5 = arith.constant 0 : index
    %6 = vector.load %arg6[%c0_4, %c0_5] : memref<1x128xf32, #tpu.memory_space<vmem>>, vector<1x128xf32>
    %7 = vector.broadcast %6 : vector<1x128xf32> to vector<16x128xf32>
    %8 = arith.addf %5, %7 : vector<16x128xf32>
    %cst_6 = arith.constant 0.000000e+00 : f32
    %9 = vector.broadcast %cst_6 : f32 to vector<16x128xf32>
    %10 = arith.maximumf %8, %9 : vector<16x128xf32>
    %c0_7 = arith.constant 0 : index
    %c0_8 = arith.constant 0 : index
    %11 = vector.load %arg7[%c0_7, %c0_8] : memref<16x128xf32, #tpu.memory_space<vmem>>, vector<16x128xf32>
    tpu.vector_store %arg7[%c0_7, %c0_8], %10 {strides = array<i32>} : memref<16x128xf32, #tpu.memory_space<vmem>>, vector<16x128xf32>,
    return
  }
  func.func @transform_0(%arg0: i32, %arg1: i32) -> (i32, i32) {
    %c0_i32 = arith.constant 0 : i32
    %c0_i32_0 = arith.constant 0 : i32
    return %arg0, %c0_i32 : i32, i32
  }
  func.func @transform_1(%arg0: i32, %arg1: i32) -> (i32, i32) {
    %c0_i32 = arith.constant 0 : i32
    %c0_i32_0 = arith.constant 0 : i32
    %c0_i32_1 = arith.constant 0 : i32
    return %c0_i32, %c0_i32_0 : i32, i32
  }
  func.func @transform_2(%arg0: i32, %arg1: i32) -> (i32, i32) {
    %c0_i32 = arith.constant 0 : i32
    %c0_i32_0 = arith.constant 0 : i32
    %c0_i32_1 = arith.constant 0 : i32
    return %c0_i32, %c0_i32_0 : i32, i32
  }
  func.func @transform_3(%arg0: i32, %arg1: i32) -> (i32, i32) {
    %c0_i32 = arith.constant 0 : i32
    %c0_i32_0 = arith.constant 0 : i32
    return %c0_i32, %arg1 : i32, i32
  }
  func.func @transform_4(%arg0: i32, %arg1: i32) -> (i32, i32) {
    %c0_i32 = arith.constant 0 : i32
    %c0_i32_0 = arith.constant 0 : i32
    return %c0_i32, %arg1 : i32, i32
  }
  func.func @transform_5(%arg0: i32, %arg1: i32) -> (i32, i32) {
    %c0_i32 = arith.constant 0 : i32
    return %arg0, %arg1 : i32, i32
  }
}

</mosaic_0001>

<bundles_post_ra>
// kernel: tpu_custom_call.1
= control target key start
LH: loop header
LB: loop body
LE: loop exit
PB: predicated region body
PF: predicated region fallthrough
CT: control target
= control target key end

     0   :  { %10 = vsyncpa [#allocation4], 0  ;;  %s673_s0 = inlined_call_operand.hbm [shape: f32[16,128], index: 0, kind: input, shape index: {}]   ;;  %s674_s1 = inlined_call_operand.hbm [shape: f32[128,128], index: 1, kind: input, shape index: {}]   ;;  %s675_s2 = inlined_call_operand.vmem [shape: f32[1,128], index: 2, kind: input, shape index: {}]   ;;  %s676_s3 = inlined_call_operand.hbm [shape: f32[128,128], index: 3, kind: input, shape index: {}]   ;;  %s677_s4 = inlined_call_operand.vmem [shape: f32[1,128], index: 4, kind: input, shape index: {}]   ;;  %s678_s5 = inlined_call_operand.hbm [shape: f32[16,128], index: 5, kind: output, shape index: {}]  }
   0x1   :  { %11 = vsyncpa [#allocation7], 0 }
   0x2   :  { %12 = vsyncpa [#allocation5], 0  ;;  %s564_s18 = smov [#allocation6]   ;;  %s565_s20 = smov [#allocation3]  }
   0x3   :  { %s30_s19 = sshll.u32 %s564_s18, 4  ;;  %s18_s21 = sshll.u32 %s565_s20, 4  ;;  %s31_s19 = int_to_ptr.vmem [resolvable:$true] %s30_s19  ;;  %s600_s21 = int_to_ptr.vmem [resolvable:$true] %s18_s21 }
   0x4   :  { %s470_s24 = scalar_lea.hbm %s674_s1, 2048 }
   0x5   :  { %p471_p0 = scmp.ne.s32.totalorder %s674_s1, %s470_s24  ;;  %p474_p1 = scmp.lt.u32.totalorder %s470_s24, %s674_s1 }
   0x7   :  { %p476_p2 = pnand %p474_p1, %p471_p0 }
   0x9   :  { %479 = shalt.err (!%p476_p2)
}
   0xa   :  { %s480_s29 = scalar_lea.vmem %s31_s19, 2048  ;;  %p485_p4 = scmp.lt.s32.totalorder %s31_s19, %s31_s19 }
   0xb   :  { %p481_p3 = scmp.ne.s32.totalorder %s31_s19, %s480_s29  ;;  %p486_p5 = scmp.lt.s32.totalorder %s480_s29, %s480_s29 }
   0xd   :  { %p487_p6 = por %p486_p5, %p485_p4 }
   0xf   :  { %p488_p7 = pnand %p487_p6, %p481_p3 }
  0x11   :  { %491 = shalt.err (!%p488_p7)
}
  0x12   :  { %s566_s30 = smov 128   ;;  %s567_s6 = smov 8  }
  0x13   :  { %36 = dma.hbm_to_vmem [thread:$0]  %s674_s1, 2048, %s31_s19, [#allocation7], %s566_s30, %s566_s30, %s567_s6  }
  0x14   :  { %s492_s11 = scalar_lea.hbm %s673_s0, 256 }
  0x15   :  { %p493_p8 = scmp.ne.s32.totalorder %s673_s0, %s492_s11  ;;  %p496_p9 = scmp.lt.u32.totalorder %s492_s11, %s673_s0 }
  0x17   :  { %p498_p10 = pnand %p496_p9, %p493_p8 }
  0x19   :  { %501 = shalt.err (!%p498_p10)
}
  0x1a   :  { %s502_s16 = scalar_lea.vmem %s600_s21, 256  ;;  %p507_p12 = scmp.lt.s32.totalorder %s600_s21, %s600_s21 }
  0x1b   :  { %p503_p11 = scmp.ne.s32.totalorder %s600_s21, %s502_s16  ;;  %p508_p13 = scmp.lt.s32.totalorder %s502_s16, %s502_s16 }
  0x1d   :  { %p509_p0 = por %p508_p13, %p507_p12 }
  0x1f   :  { %p510_p1 = pnand %p509_p0, %p503_p11 }
  0x21   :  { %513 = shalt.err (!%p510_p1)
}
  0x22   :  { %24 = dma.hbm_to_vmem [thread:$0]  %s673_s0, 256, %s600_s21, [#allocation4], %s566_s30, %s566_s30, %s567_s6  }
  0x23   :  { %s568_s18 = smov [#allocation8]   ;;  %s514_s23 = scalar_lea.hbm %s676_s3, 2048 }
  0x24   :  { %s44_s19 = sshll.u32 %s568_s18, 4  ;;  %p515_p2 = scmp.ne.s32.totalorder %s676_s3, %s514_s23  ;;  %s45_s19 = int_to_ptr.vmem [resolvable:$true] %s44_s19 }
  0x25   :  { %p518_p3 = scmp.lt.u32.totalorder %s514_s23, %s676_s3 }
  0x27   :  { %p520_p4 = pnand %p518_p3, %p515_p2 }
  0x29   :  { %523 = shalt.err (!%p520_p4)
}
  0x2a   :  { %s524_s28 = scalar_lea.vmem %s45_s19, 2048  ;;  %p529_p6 = scmp.lt.s32.totalorder %s45_s19, %s45_s19 }
  0x2b   :  { %p525_p5 = scmp.ne.s32.totalorder %s45_s19, %s524_s28  ;;  %p530_p7 = scmp.lt.s32.totalorder %s524_s28, %s524_s28 }
  0x2d   :  { %p531_p8 = por %p530_p7, %p529_p6 }
  0x2f   :  { %p532_p9 = pnand %p531_p8, %p525_p5 }
  0x31   :  { %535 = shalt.err (!%p532_p9)
}
  0x32   :  { %50 = dma.hbm_to_vmem [thread:$0]  %s676_s3, 2048, %s45_s19, [#allocation7], %s566_s30, %s566_s30, %s567_s6  }
  0x33   :  { %558 = dma.done.wait [#allocation4], 256  }
  0x34   :  { %559 = vsyncadd [#allocation4], 4294967040 }
  0x35   :  { %560 = dma.done.wait [#allocation7], 4096  }
  0x36   :  { %561 = vsyncadd [#allocation7], 4294963200  ;;  %v68_v0 = vld [vmem:[#allocation6] sm:$0xff]  ;;  %v69_v1 = vld [vmem:[#allocation6 + $0x8] sm:$0xff]  ;;  %s569_s9 = smov [#allocation9]  }
  0x37   :  { %v70_v2 = vld [vmem:[#allocation6 + $0x10] sm:$0xff]  ;;  %v400_v3 = vpack.c.bf16 %v69_v1, %v68_v0  ;;  %v71_v4 = vld [vmem:[#allocation6 + $0x18] sm:$0xff]  ;;  %v72_v6 = vld [vmem:[#allocation6 + $0x20] sm:$0xff]  ;;  %s279_s10 = sshll.u32 %s569_s9, 4  ;;  %s280_s10 = int_to_ptr.vmem [resolvable:$true] %s279_s10 }
  0x38   :  { %v404_v5 = vpack.c.bf16 %v71_v4, %v70_v2  ;;  %v73_v7 = vld [vmem:[#allocation6 + $0x28] sm:$0xff]  ;;  %v74_v9 = vld [vmem:[#allocation6 + $0x30] sm:$0xff]  ;;  %v75_v10 = vld [vmem:[#allocation6 + $0x38] sm:$0xff]  ;;  %p541_p11 = scmp.lt.s32.totalorder %s280_s10, %s280_s10 }
  0x39   :  { %401 = vmatprep.subr.bf16.mxu0 %v400_v3  ;;  %v408_v8 = vpack.c.bf16 %v73_v7, %v72_v6  ;;  %v66_v11 = vld [vmem:[#allocation3] sm:$0xff]  ;;  %v172_v12 = vld [vmem:[#allocation8] sm:$0xff]  ;;  %v173_v13 = vld [vmem:[#allocation8 + $0x8] sm:$0xff]  ;;  %v412_v20 = vpack.c.bf16 %v75_v10, %v74_v9 }
  0x3a   :  { %403 = vmatpush3.bf16.msra.mxu0 %v400_v3  ;;  %362 = vmatprep.mubr.f32.mxu0 %v66_v11  ;;  %v174_v14 = vld [vmem:[#allocation8 + $0x10] sm:$0xff]  ;;  %v432_v15 = vpack.c.bf16 %v173_v13, %v172_v12  ;;  %v175_v16 = vld [vmem:[#allocation8 + $0x18] sm:$0xff]  ;;  %v176_v18 = vld [vmem:[#allocation8 + $0x20] sm:$0xff] }
  0x3b   :  { %405 = vmatprep.subr.bf16.mxu0 %v404_v5  ;;  %v436_v17 = vpack.c.bf16 %v175_v16, %v174_v14  ;;  %v177_v19 = vld [vmem:[#allocation8 + $0x28] sm:$0xff]  ;;  %v76_v21 = vld [vmem:[#allocation6 + $0x40] sm:$0xff]  ;;  %v178_v24 = vld [vmem:[#allocation8 + $0x30] sm:$0xff] }
  0x3c   :  { %433 = vmatprep.subr.bf16.mxu1 %v432_v15  ;;  %v77_v22 = vld [vmem:[#allocation6 + $0x48] sm:$0xff]  ;;  %v440_v23 = vpack.c.bf16 %v177_v19, %v176_v18  ;;  %v179_v25 = vld [vmem:[#allocation8 + $0x38] sm:$0xff]  ;;  %v78_v27 = vld [vmem:[#allocation6 + $0x50] sm:$0xff] }
  0x3d   :  { %435 = vmatpush3.bf16.msra.mxu1 %v432_v15  ;;  %v416_v26 = vpack.c.bf16 %v77_v22, %v76_v21  ;;  %v79_v28 = vld [vmem:[#allocation6 + $0x58] sm:$0xff]  ;;  %v444_v29 = vpack.c.bf16 %v179_v25, %v178_v24  ;;  %v180_v30 = vld [vmem:[#allocation8 + $0x40] sm:$0xff]  ;;  %v181_v31 = vld [vmem:[#allocation8 + $0x48] sm:$0xff] }
  0x3e   :  { %407 = vmatpush3.bf16.msra.mxu0 %v404_v5  ;;  %437 = vmatprep.subr.bf16.mxu1 %v436_v17  ;;  %v420_v32 = vpack.c.bf16 %v79_v28, %v78_v27  ;;  %v80_v33 = vld [vmem:[#allocation6 + $0x60] sm:$0xff]  ;;  %v81_v34 = vld [vmem:[#allocation6 + $0x68] sm:$0xff]  ;;  %v448_v35 = vpack.c.bf16 %v181_v31, %v180_v30  ;;  %v182_v36 = vld [vmem:[#allocation8 + $0x50] sm:$0xff] }
  0x3f   :  { %409 = vmatprep.subr.bf16.mxu0 %v408_v8  ;;  %v183_v37 = vld [vmem:[#allocation8 + $0x58] sm:$0xff]  ;;  %v424_v38 = vpack.c.bf16 %v81_v34, %v80_v33  ;;  %v82_v39 = vld [vmem:[#allocation6 + $0x70] sm:$0xff]  ;;  %v184_v42 = vld [vmem:[#allocation8 + $0x60] sm:$0xff] }
  0x40   :  { %v83_v40 = vld [vmem:[#allocation6 + $0x78] sm:$0xff]  ;;  %v452_v41 = vpack.c.bf16 %v183_v37, %v182_v36  ;;  %v185_v43 = vld [vmem:[#allocation8 + $0x68] sm:$0xff]  ;;  %v186_v47 = vld [vmem:[#allocation8 + $0x70] sm:$0xff] }
  0x41   :  { %439 = vmatpush3.bf16.msra.mxu1 %v436_v17  ;;  %v428_v44 = vpack.c.bf16 %v83_v40, %v82_v39  ;;  %v456_v45 = vpack.c.bf16 %v185_v43, %v184_v42  ;;  %v67_v46 = vld [vmem:[#allocation3 + $0x8] sm:$0xff]  ;;  %v292_v50 = vld [vmem:[%s675_s2] ss:$0 sm:$0xff]  ;;  %s536_s2 = scalar_lea.vmem %s280_s10, 256 }
  0x42   :  { %411 = vmatpush3.bf16.msra.mxu0 %v408_v8  ;;  %441 = vmatprep.subr.bf16.mxu1 %v440_v23  ;;  %v187_v48 = vld [vmem:[#allocation8 + $0x78] sm:$0xff]  ;;  %v293_v57 = vld [vmem:[%s677_s4] ss:$0 sm:$0xff]  ;;  %p537_p10 = scmp.ne.s32.totalorder %s280_s10, %s536_s2  ;;  %p542_p12 = scmp.lt.s32.totalorder %s536_s2, %s536_s2 }
  0x43   :  { %413 = vmatprep.subr.bf16.mxu0 %v412_v20  ;;  %v460_v49 = vpack.c.bf16 %v187_v48, %v186_v47 }
  0x44   :  { %p543_p13 = por %p542_p12, %p541_p11 }
  0x45   :  { %443 = vmatpush3.bf16.msra.mxu1 %v440_v23 }
  0x46   :  { %415 = vmatpush3.bf16.msra.mxu0 %v412_v20  ;;  %445 = vmatprep.subr.bf16.mxu1 %v444_v29  ;;  %p544_p0 = pnand %p543_p13, %p537_p10 }
  0x47   :  { %417 = vmatprep.subr.bf16.mxu0 %v416_v26 }
  0x49   :  { %447 = vmatpush3.bf16.msra.mxu1 %v444_v29 }
  0x4a   :  { %419 = vmatpush3.bf16.msra.mxu0 %v416_v26  ;;  %449 = vmatprep.subr.bf16.mxu1 %v448_v35 }
  0x4b   :  { %421 = vmatprep.subr.bf16.mxu0 %v420_v32 }
  0x4d   :  { %451 = vmatpush3.bf16.msra.mxu1 %v448_v35 }
  0x4e   :  { %423 = vmatpush3.bf16.msra.mxu0 %v420_v32  ;;  %453 = vmatprep.subr.bf16.mxu1 %v452_v41 }
  0x4f   :  { %425 = vmatprep.subr.bf16.mxu0 %v424_v38 }
  0x51   :  { %455 = vmatpush3.bf16.msra.mxu1 %v452_v41 }
  0x52   :  { %427 = vmatpush3.bf16.msra.mxu0 %v424_v38  ;;  %457 = vmatprep.subr.bf16.mxu1 %v456_v45 }
  0x53   :  { %429 = vmatprep.subr.bf16.mxu0 %v428_v44 }
  0x55   :  { %459 = vmatpush3.bf16.msra.mxu1 %v456_v45 }
  0x56   :  { %431 = vmatpush3.bf16.msra.mxu0 %v428_v44  ;;  %461 = vmatprep.subr.bf16.mxu1 %v460_v49 }
  0x59   :  { %363 = vmatmul.mubr.f32.vlgmr.msra.gmra.mrb[0].mxu0 %v67_v46  ;;  %463 = vmatpush3.bf16.msra.mxu1 %v460_v49 }
 0x12c   :  { %v364_v51 = vpop.f32.mrb[0].mxu0 }
 0x12d   :  { %v163_v52 = vadd.f32 %v364_v51, %v292_v50  ;;  %v157_v53 = vpop.f32.mrb[1].mxu0 }
 0x12e   :  { %v158_v54 = vadd.f32 %v292_v50, %v157_v53 }
 0x12f   :  { %v167_v56 = vmax.f32 %v163_v52, 0.0 }
 0x130   :  { %v166_v55 = vmax.f32 %v158_v54, 0.0 }
 0x132   :  { %397 = vmatprep.mubr.f32.mxu1 %v166_v55 }
 0x133   :  { %398 = vmatmul.mubr.f32.vlgmr.msra.gmra.mrb[0].mxu1 %v167_v56 }
 0x206   :  { %v399_v58 = vpop.f32.mrb[0].mxu1 }
 0x207   :  { %v267_v59 = vadd.f32 %v399_v58, %v293_v57  ;;  %v261_v60 = vpop.f32.mrb[1].mxu1 }
 0x208   :  { %v262_v61 = vadd.f32 %v293_v57, %v261_v60 }
 0x209   :  { %v271_v62 = vmax.f32 %v267_v59, 0.0 }
 0x20a   :  { %v270_v63 = vmax.f32 %v262_v61, 0.0 }
 0x20b   :  { %273 = vst [vmem:[#allocation9 + $0x8] sm:$0xff] %v271_v62 }
 0x20c   :  { %272 = vst [vmem:[#allocation9] sm:$0xff] %v270_v63 }
 0x20d   :  { %547 = shalt.err (!%p544_p0)
}
 0x20e   :  { %s548_s12 = scalar_lea.hbm %s678_s5, 256 }
 0x20f   :  { %p549_p1 = scmp.ne.s32.totalorder %s678_s5, %s548_s12  ;;  %p552_p2 = scmp.lt.u32.totalorder %s548_s12, %s678_s5 }
 0x211   :  { %p554_p3 = pnand %p552_p2, %p549_p1 }
 0x213   :  { %557 = shalt.err (!%p554_p3)
}
 0x214   :  { %285 = dma.vmem_to_hbm [thread:$0]  %s280_s10, 256, %s678_s5, [#allocation5], %s566_s30, %s566_s30, %s567_s6  }
 0x215   :  { %562 = dma.done.wait [#allocation5], 256  }
 0x216   :  { %563 = vsyncadd [#allocation5], 4294967040 }
 0x217   :  { %289 = vsyncpa [#allocation4], 1 }
 0x218   :  { %290 = vsyncpa [#allocation7], 1 }
 0x219   :  { %291 = vsyncpa [#allocation5], 1 }

</bundles_post_ra>
